<compile_context>
chip_gen: v5e
topology: v5e:2x2
jax: 0.10.0
libtpu: 0.0.40
codegen_flags: <defaults>
</compile_context>

<pallas_src>
import jax
import jax.numpy as jnp
from jax.experimental import pallas as pl
from jax.experimental.pallas import tpu as pltpu


def _critic_kernel(x_ref, w1_ref, b1_ref, w2_ref, b2_ref, w3_ref, b3_ref,
                   o_ref):
    # x_ref : [TB, S+A]  concat(state, action) tile (f32)
    # w1_ref: [S+A, H]   w2_ref: [H, H]   w3_ref: [1, H]   (weight_dtype)
    # b1_ref: [1, H]     b2_ref: [1, H]   (f32)
    # b3_ref: [1, 1]     SMEM scalar (f32)
    # o_ref : [1, TB]    lane-dense output row for this batch tile (f32)
    w_dtype = w1_ref.dtype

    x = x_ref[...].astype(w_dtype)

    h1 = jnp.dot(x, w1_ref[...],
                 preferred_element_type=jnp.float32) + b1_ref[...]
    h1 = jnp.maximum(h1, 0.0)

    h2 = jnp.dot(h1.astype(w_dtype), w2_ref[...],
                 preferred_element_type=jnp.float32) + b2_ref[...]
    h2 = jnp.maximum(h2, 0.0)

    # fc3 as a (1,H) x (TB,H) contraction over H -> (1,TB).  Transposed-RHS
    # dimension numbers keep the result lane-dense with no XLU transpose of
    # the [TB, H] activation.
    q = jax.lax.dot_general(
        w3_ref[...], h2.astype(w_dtype),
        dimension_numbers=(((1,), (1,)), ((), ())),
        preferred_element_type=jnp.float32)
    o_ref[...] = (q + b3_ref[0, 0]).astype(o_ref.dtype)


def _round_up(x, m):
    return (x + m - 1) // m * m


def critic_forward(state, action, params, *, block_b=1024,
                   weight_dtype=jnp.bfloat16, min_tiles=1):
    """JAX/Pallas equivalent of Critic.forward(state, action).

    params = (w1, b1, w2, b2, w3, b3) with weights already transposed to
    [in, out] (i.e. torch `weight.T`):
      w1: [state_dim + action_dim, H], b1: [H] or [1, H]
      w2: [H, H],                      b2: [H] or [1, H]
      w3: [H, 1],                      b3: scalar-shaped
    weight_dtype: dtype the weights are cast to for the MXU (bf16 default;
                  accumulation is always f32).
    min_tiles   : set to 2 on v7x so both TensorCores get a batch tile.
    Returns q with shape [B, 1] (float32).

    Note: for B < 128 the single tile is lane-sparse on the output store
    (numerically correct, just not the fast path).
    """
    assert block_b % 128 == 0, "block_b must be a multiple of 128"
    w1, b1, w2, b2, w3, b3 = params

    B, S = state.shape
    A = action.shape[1]
    H = w1.shape[1]
    assert w1.shape[0] == S + A

    # One-time layout / dtype plumbing in the wrapper (uniform weight dtype).
    w1 = jnp.asarray(w1).astype(weight_dtype)                  # [S+A, H]
    w2 = jnp.asarray(w2).astype(weight_dtype)                  # [H, H]
    w3_row = jnp.asarray(w3).reshape(1, H).astype(weight_dtype)  # [1, H]
    b1 = jnp.asarray(b1, jnp.float32).reshape(1, H)
    b2 = jnp.asarray(b2, jnp.float32).reshape(1, H)
    b3 = jnp.asarray(b3, jnp.float32).reshape(1, 1)            # SMEM scalar

    # torch.cat fused in the wrapper: tiny [B, S+A] HBM round trip, single
    # K=S+A MXU pass for fc1 inside the kernel.
    x = jnp.concatenate([jnp.asarray(state, jnp.float32),
                         jnp.asarray(action, jnp.float32)], axis=1)

    # Batch tiling: big tiles to amortize per-grid-step overhead; tb multiple
    # of 128 whenever tb < b_pad so the (1, tb) output store stays lane-dense.
    if min_tiles > 1:
        tb = min(block_b, max(128, _round_up(-(-B // min_tiles), 128)))
    else:
        tb = min(block_b, _round_up(B, 8))
    b_pad = _round_up(B, tb)
    if b_pad != B:
        x = jnp.pad(x, ((0, b_pad - B), (0, 0)))
    num_tiles = b_pad // tb

    # VMEM footprint estimate (double-buffered tiles/weights + intermediates),
    # capped at v7x's 64 MiB physical VMEM.
    w_bytes = w2.dtype.itemsize
    vmem_est = (2 * tb * _round_up(S + A, 128) * 4
                + 2 * ((S + A) * H + H * H + H) * w_bytes
                + 2 * (2 * _round_up(H, 128) + 128) * 4
                + 3 * tb * _round_up(H, 128) * 4
                + 2 * _round_up(tb, 128) * 4)
    vmem_limit = int(min(max(32 * 1024 * 1024, 2 * vmem_est),
                         64 * 1024 * 1024))

    flops = 2 * b_pad * ((S + A) * H + H * H + H)
    bytes_accessed = (b_pad * (S + A) * 4
                      + (w1.size + w2.size + w3_row.size) * w_bytes
                      + (b1.size + b2.size + b3.size) * 4
                      + b_pad * 4)

    def resident(shape):
        # Weights/biases stay VMEM-resident across batch tiles.
        return pl.BlockSpec(shape, lambda i: (0, 0))

    out = pl.pallas_call(
        _critic_kernel,
        out_shape=jax.ShapeDtypeStruct((1, b_pad), jnp.float32),
        grid=(num_tiles,),
        in_specs=[
            pl.BlockSpec((tb, S + A), lambda i: (i, 0)),        # x tile
            resident((S + A, H)),                               # w1
            resident((1, H)),                                   # b1
            resident((H, H)),                                   # w2
            resident((1, H)),                                   # b2
            resident((1, H)),                                   # w3 row
            pl.BlockSpec(memory_space=pltpu.MemorySpace.SMEM),  # b3 scalar
        ],
        out_specs=pl.BlockSpec((1, tb), lambda i: (0, i)),
        compiler_params=pltpu.CompilerParams(
            dimension_semantics=("parallel",),
            vmem_limit_bytes=vmem_limit,
        ),
        cost_estimate=pl.CostEstimate(
            flops=flops, transcendentals=0, bytes_accessed=bytes_accessed),
    )(x, w1, b1, w2, b2, w3_row, b3)

    return out[0, :B].reshape(B, 1)


def init_critic_params(key, state_dim, action_dim, hidden_dim=256):
    """Deterministic synthetic parameters matching nn.Linear init/shapes.

    PyTorch stores W as [out, in]; we build [out, in] then transpose to
    [in, out] for the kernel. Biases kept as [1, out].
    """
    in_dim = state_dim + action_dim
    keys = jax.random.split(key, 6)

    def linear(kw, kb, fan_in, fan_out):
        bound = 1.0 / jnp.sqrt(fan_in)
        w = jax.random.uniform(kw, (fan_out, fan_in), jnp.float32, -bound, bound)
        b = jax.random.uniform(kb, (fan_out,), jnp.float32, -bound, bound)
        return w.T, b.reshape(1, fan_out)

    w1, b1 = linear(keys[0], keys[1], in_dim, hidden_dim)
    w2, b2 = linear(keys[2], keys[3], hidden_dim, hidden_dim)
    w3, b3 = linear(keys[4], keys[5], hidden_dim, 1)
    return (w1, b1, w2, b2, w3, b3)


def _ref_forward(state, action, params):
    w1, b1, w2, b2, w3, b3 = params
    hp = jax.lax.Precision.HIGHEST
    x = jnp.concatenate([state, action], axis=1)
    h = jnp.maximum(jnp.dot(x, w1, precision=hp) + b1.reshape(1, -1), 0.0)
    h = jnp.maximum(jnp.dot(h, w2, precision=hp) + b2.reshape(1, -1), 0.0)
    return jnp.dot(h, w3, precision=hp) + b3.reshape(1, 1)


if __name__ == "__main__":
    # Small shapes consistent with the module's forward.
    batch, state_dim, action_dim, hidden_dim = 8, 12, 4, 128

    key = jax.random.PRNGKey(0)
    k_state, k_action, k_params = jax.random.split(key, 3)

    state = jax.random.normal(k_state, (batch, state_dim), jnp.float32)
    action = jax.random.normal(k_action, (batch, action_dim), jnp.float32)
    params = init_critic_params(k_params, state_dim, action_dim, hidden_dim)
    ref = _ref_forward(state, action, params)

    # 1) f32-weight path, single small tile: near-exact vs reference.
    q32 = critic_forward(state, action, params, weight_dtype=jnp.float32)
    jax.block_until_ready(q32)
    assert q32.shape == (batch, 1)
    assert jnp.allclose(q32, ref, atol=1e-4, rtol=1e-4), "mismatch (f32 path)"

    # 2) default bf16-weight MXU path (f32 accumulation): looser tolerance.
    qbf = critic_forward(state, action, params)
    jax.block_until_ready(qbf)
    assert jnp.allclose(qbf, ref, atol=3e-2, rtol=3e-2), "mismatch (bf16 path)"

    # 3) multi-tile batch: grid > 1, batch padding, resident weights.
    batch2 = 300
    k_s2, k_a2 = jax.random.split(jax.random.PRNGKey(1))
    state2 = jax.random.normal(k_s2, (batch2, state_dim), jnp.float32)
    action2 = jax.random.normal(k_a2, (batch2, action_dim), jnp.float32)
    ref2 = _ref_forward(state2, action2, params)

    q2 = critic_forward(state2, action2, params, block_b=128,
                        weight_dtype=jnp.float32)
    jax.block_until_ready(q2)
    assert q2.shape == (batch2, 1)
    assert jnp.allclose(q2, ref2, atol=1e-4, rtol=1e-4), "mismatch (tiled f32)"

    # 4) v7x-style split: at least 2 batch tiles + bf16 weights.
    q3 = critic_forward(state2, action2, params, min_tiles=2)
    jax.block_until_ready(q3)
    assert q3.shape == (batch2, 1)
    assert jnp.allclose(q3, ref2, atol=3e-2, rtol=3e-2), "mismatch (min_tiles=2)"

    print("KERNEL_OK")
</pallas_src>

<mosaic_0001>
module attributes {stable_mosaic.version = 11 : i64} {
  func.func @_critic_kernel(%arg0: i32, %arg1: memref<8x16xf32, #tpu.memory_space<vmem>>, %arg2: memref<16x128xf32, #tpu.memory_space<vmem>>, %arg3: memref<1x128xf32, #tpu.memory_space<vmem>>, %arg4: memref<128x128xf32, #tpu.memory_space<vmem>>, %arg5: memref<1x128xf32, #tpu.memory_space<vmem>>, %arg6: memref<1x128xf32, #tpu.memory_space<vmem>>, %arg7: memref<1x1xf32, #tpu.memory_space<smem>>, %arg8: memref<1x8xf32, #tpu.memory_space<vmem>>) attributes {dimension_semantics = [#tpu.dimension_semantics<parallel>], iteration_bounds = array<i64: 1>, scalar_prefetch = 0 : i64, scratch_operands = 0 : i64, tpu.core_type = #tpu.core_type<tc>, window_params = [{transform_indices = @transform_0, window_bounds = array<i64: 8, 16>}, {pipeline_mode = #tpu.pipeline_mode<synchronous>, transform_indices = @transform_1, window_bounds = array<i64: 16, 128>}, {pipeline_mode = #tpu.pipeline_mode<synchronous>, transform_indices = @transform_2, window_bounds = array<i64: 1, 128>}, {pipeline_mode = #tpu.pipeline_mode<synchronous>, transform_indices = @transform_3, window_bounds = array<i64: 128, 128>}, {pipeline_mode = #tpu.pipeline_mode<synchronous>, transform_indices = @transform_4, window_bounds = array<i64: 1, 128>}, {pipeline_mode = #tpu.pipeline_mode<synchronous>, transform_indices = @transform_5, window_bounds = array<i64: 1, 128>}, {transform_indices = @transform_6, window_bounds = array<i64: 1, 1>}, {transform_indices = @transform_7, window_bounds = array<i64: 1, 8>}]} {
    %c0 = arith.constant 0 : index
    %c0_0 = arith.constant 0 : index
    %0 = vector.load %arg1[%c0, %c0_0] : memref<8x16xf32, #tpu.memory_space<vmem>>, vector<8x16xf32>
    %c0_1 = arith.constant 0 : index
    %c0_2 = arith.constant 0 : index
    %1 = vector.load %arg2[%c0_1, %c0_2] : memref<16x128xf32, #tpu.memory_space<vmem>>, vector<16x128xf32>
    %cst = arith.constant dense<0.000000e+00> : vector<8x128xf32>
    %2 = tpu.matmul %0, %1, %cst {dimension_numbers = #tpu.dot_dimension_numbers<[1], [0], [0], [1], [0, 0, 1, 1], [], []>} : vector<8x16xf32>, vector<16x128xf32>, vector<8x128xf32> -> vector<8x128xf32>
    %c0_3 = arith.constant 0 : index
    %c0_4 = arith.constant 0 : index
    %3 = vector.load %arg3[%c0_3, %c0_4] : memref<1x128xf32, #tpu.memory_space<vmem>>, vector<1x128xf32>
    %4 = vector.broadcast %3 : vector<1x128xf32> to vector<8x128xf32>
    %5 = arith.addf %2, %4 : vector<8x128xf32>
    %cst_5 = arith.constant 0.000000e+00 : f32
    %6 = vector.broadcast %cst_5 : f32 to vector<8x128xf32>
    %7 = arith.maximumf %5, %6 : vector<8x128xf32>
    %c0_6 = arith.constant 0 : index
    %c0_7 = arith.constant 0 : index
    %8 = vector.load %arg4[%c0_6, %c0_7] : memref<128x128xf32, #tpu.memory_space<vmem>>, vector<128x128xf32>
    %cst_8 = arith.constant dense<0.000000e+00> : vector<8x128xf32>
    %9 = tpu.matmul %7, %8, %cst_8 {dimension_numbers = #tpu.dot_dimension_numbers<[1], [0], [0], [1], [0, 0, 1, 1], [], []>} : vector<8x128xf32>, vector<128x128xf32>, vector<8x128xf32> -> vector<8x128xf32>
    %c0_9 = arith.constant 0 : index
    %c0_10 = arith.constant 0 : index
    %10 = vector.load %arg5[%c0_9, %c0_10] : memref<1x128xf32, #tpu.memory_space<vmem>>, vector<1x128xf32>
    %11 = vector.broadcast %10 : vector<1x128xf32> to vector<8x128xf32>
    %12 = arith.addf %9, %11 : vector<8x128xf32>
    %cst_11 = arith.constant 0.000000e+00 : f32
    %13 = vector.broadcast %cst_11 : f32 to vector<8x128xf32>
    %14 = arith.maximumf %12, %13 : vector<8x128xf32>
    %c0_12 = arith.constant 0 : index
    %c0_13 = arith.constant 0 : index
    %15 = vector.load %arg6[%c0_12, %c0_13] : memref<1x128xf32, #tpu.memory_space<vmem>>, vector<1x128xf32>
    %cst_14 = arith.constant dense<0.000000e+00> : vector<1x8xf32>
    %16 = tpu.matmul %15, %14, %cst_14 {dimension_numbers = #tpu.dot_dimension_numbers<[1], [1], [0], [0], [0, 0, 1, 0], [], []>} : vector<1x128xf32>, vector<8x128xf32>, vector<1x8xf32> -> vector<1x8xf32>
    %c0_15 = arith.constant 0 : index
    %c0_16 = arith.constant 0 : index
    %17 = memref.load %arg7[%c0_15, %c0_16] : memref<1x1xf32, #tpu.memory_space<smem>>
    %18 = vector.broadcast %17 : f32 to vector<1x8xf32>
    %19 = arith.addf %16, %18 : vector<1x8xf32>
    %c0_17 = arith.constant 0 : index
    %c0_18 = arith.constant 0 : index
    %20 = vector.load %arg8[%c0_17, %c0_18] : memref<1x8xf32, #tpu.memory_space<vmem>>, vector<1x8xf32>
    tpu.vector_store %arg8[%c0_17, %c0_18], %19 {strides = array<i32>} : memref<1x8xf32, #tpu.memory_space<vmem>>, vector<1x8xf32>,
    return
  }
  func.func @transform_0(%arg0: i32) -> (i32, i32) {
    %c0_i32 = arith.constant 0 : i32
    %c0_i32_0 = arith.constant 0 : i32
    return %arg0, %c0_i32 : i32, i32
  }
  func.func @transform_1(%arg0: i32) -> (i32, i32) {
    %c0_i32 = arith.constant 0 : i32
    %c0_i32_0 = arith.constant 0 : i32
    %c0_i32_1 = arith.constant 0 : i32
    return %c0_i32, %c0_i32_0 : i32, i32
  }
  func.func @transform_2(%arg0: i32) -> (i32, i32) {
    %c0_i32 = arith.constant 0 : i32
    %c0_i32_0 = arith.constant 0 : i32
    %c0_i32_1 = arith.constant 0 : i32
    return %c0_i32, %c0_i32_0 : i32, i32
  }
  func.func @transform_3(%arg0: i32) -> (i32, i32) {
    %c0_i32 = arith.constant 0 : i32
    %c0_i32_0 = arith.constant 0 : i32
    %c0_i32_1 = arith.constant 0 : i32
    return %c0_i32, %c0_i32_0 : i32, i32
  }
  func.func @transform_4(%arg0: i32) -> (i32, i32) {
    %c0_i32 = arith.constant 0 : i32
    %c0_i32_0 = arith.constant 0 : i32
    %c0_i32_1 = arith.constant 0 : i32
    return %c0_i32, %c0_i32_0 : i32, i32
  }
  func.func @transform_5(%arg0: i32) -> (i32, i32) {
    %c0_i32 = arith.constant 0 : i32
    %c0_i32_0 = arith.constant 0 : i32
    %c0_i32_1 = arith.constant 0 : i32
    return %c0_i32, %c0_i32_0 : i32, i32
  }
  func.func @transform_6(%arg0: i32) -> (i32, i32) {
    %c0_i32 = arith.constant 0 : i32
    %c0_i32_0 = arith.constant 0 : i32
    %c0_i32_1 = arith.constant 0 : i32
    return %c0_i32, %c0_i32_0 : i32, i32
  }
  func.func @transform_7(%arg0: i32) -> (i32, i32) {
    %c0_i32 = arith.constant 0 : i32
    %c0_i32_0 = arith.constant 0 : i32
    return %c0_i32, %arg0 : i32, i32
  }
}

</mosaic_0001>

<bundles_post_ra>
// kernel: tpu_custom_call.1
= control target key start
LH: loop header
LB: loop body
LE: loop exit
PB: predicated region body
PF: predicated region fallthrough
CT: control target
= control target key end

     0   :  { %13 = vsyncpa [#allocation4], 0  ;;  %s370_s0 = inlined_call_operand.hbm [shape: f32[8,16], index: 0, kind: input, shape index: {}]   ;;  %s371_s1 = inlined_call_operand.hbm [shape: f32[16,128], index: 1, kind: input, shape index: {}]   ;;  %s372_s2 = inlined_call_operand.vmem [shape: f32[1,128], index: 2, kind: input, shape index: {}]   ;;  %s373_s3 = inlined_call_operand.hbm [shape: f32[128,128], index: 3, kind: input, shape index: {}]   ;;  %s374_s4 = inlined_call_operand.vmem [shape: f32[1,128], index: 4, kind: input, shape index: {}]   ;;  %s375_s5 = inlined_call_operand.vmem [shape: f32[1,128], index: 5, kind: input, shape index: {}]   ;;  %s376_s6 = inlined_call_operand.<no memory space> [shape: f32[1,1], index: 6, kind: input, shape index: {}]   ;;  %s377_s7 = inlined_call_operand.hbm [shape: f32[1,8], index: 7, kind: output, shape index: {}]  }
   0x1   :  { %14 = vsyncpa [#allocation7], 0  ;;  %s31_s26 = sshll.u32 %s371_s1, 4  ;;  %s32_s26 = int_to_ptr.hbm [resolvable:$true] %s31_s26 }
   0x2   :  { %15 = vsyncpa [#allocation5], 0  ;;  %s300_s27 = smov [#allocation6]   ;;  %s21_s8 = sshll.u32 %s370_s0, 4  ;;  %s22_s8 = int_to_ptr.hbm [resolvable:$true] %s21_s8 }
   0x3   :  { %s33_s28 = sshll.u32 %s300_s27, 4  ;;  %s301_s9 = smov 128   ;;  %s34_s28 = int_to_ptr.vmem [resolvable:$true] %s33_s28 }
   0x4   :  { %s302_s10 = smov 8   ;;  %s303_s11 = smov [#allocation3]  }
   0x5   :  { %39 = dma.hbm_to_vmem [thread:$0]  %s32_s26, 256, %s34_s28, [#allocation7], %s301_s9, %s301_s9, %s302_s10  }
   0x6   :  { %s23_s12 = sshll.u32 %s303_s11, 4  ;;  %s46_s15 = sshll.u32 %s373_s3, 4  ;;  %s24_s12 = int_to_ptr.vmem [resolvable:$true] %s23_s12  ;;  %s47_s15 = int_to_ptr.hbm [resolvable:$true] %s46_s15 }
   0x7   :  { %26 = dma.hbm_to_vmem [thread:$0]  %s22_s8, 128, %s24_s12, [#allocation4]  }
   0x8   :  { %s304_s1 = smov [#allocation8]  }
   0x9   :  { %s48_s16 = sshll.u32 %s304_s1, 4  ;;  %s49_s16 = int_to_ptr.vmem [resolvable:$true] %s48_s16 }
   0xa   :  { %54 = dma.hbm_to_vmem [thread:$0]  %s47_s15, 2048, %s49_s16, [#allocation7], %s301_s9, %s301_s9, %s302_s10  }
   0xb   :  { %294 = dma.done.wait [#allocation4], 128  }
   0xc   :  { %295 = vsyncadd [#allocation4], 4294967168 }
   0xd   :  { %296 = dma.done.wait [#allocation7], 2304  }
   0xe   :  { %297 = vsyncadd [#allocation7], 4294964992  ;;  %v75_v0 = vld [vmem:[#allocation6 + $0x8] sm:$0xff]  ;;  %v74_v1 = vld [vmem:[#allocation6] sm:$0xff]  ;;  %vm80_vm0 = vcmask 130048   ;;  %v148_v28 = vstv %s376_s6  ;;  %s178_s26 = sshll.u32 %s377_s7, 4  ;;  %s179_s26 = int_to_ptr.hbm [resolvable:$true] %s178_s26 }
   0xf   :  { %98 = vmatpush.msra.mxu0 %v75_v0  ;;  %v73_v2 = vld [vmem:[#allocation3] sm:$0xff]  ;;  %v120_v3 = vld [vmem:[#allocation8 + $0x78] sm:$0xff]  ;;  %v119_v4 = vld [vmem:[#allocation8 + $0x70] sm:$0xff]  ;;  %vm169_vm1 = vcmask 57344  }
  0x10   :  { %125 = vmatpush.msra.mxu1 %v120_v3  ;;  %v118_v5 = vld [vmem:[#allocation8 + $0x68] sm:$0xff]  ;;  %v117_v6 = vld [vmem:[#allocation8 + $0x60] sm:$0xff]  ;;  %v116_v7 = vld [vmem:[#allocation8 + $0x58] sm:$0xff] }
  0x11   :  { %99 = vmatpush.msra.mxu0 %v74_v1  ;;  %v115_v8 = vld [vmem:[#allocation8 + $0x50] sm:$0xff]  ;;  %v114_v9 = vld [vmem:[#allocation8 + $0x48] sm:$0xff]  ;;  %v113_v10 = vld [vmem:[#allocation8 + $0x40] sm:$0xff] }
  0x12   :  { %189 = vmatmul.msk.f32.vlgmr.msra.gmra.mxu0 %vm80_vm0, %v73_v2  ;;  %126 = vmatpush.msra.mxu1 %v119_v4  ;;  %v112_v11 = vld [vmem:[#allocation8 + $0x38] sm:$0xff]  ;;  %v111_v12 = vld [vmem:[#allocation8 + $0x30] sm:$0xff]  ;;  %v110_v13 = vld [vmem:[#allocation8 + $0x28] sm:$0xff] }
  0x13   :  { %v109_v14 = vld [vmem:[#allocation8 + $0x20] sm:$0xff]  ;;  %v108_v15 = vld [vmem:[#allocation8 + $0x18] sm:$0xff]  ;;  %v107_v16 = vld [vmem:[#allocation8 + $0x10] sm:$0xff] }
  0x14   :  { %127 = vmatpush.msra.mxu1 %v118_v5  ;;  %v106_v17 = vld [vmem:[#allocation8 + $0x8] sm:$0xff]  ;;  %v105_v18 = vld [vmem:[#allocation8] sm:$0xff] }
  0x15   :  { %v196_v19 = vld [vmem:[%s372_s2] ss:$0 sm:$0xff]  ;;  %s305_s2 = smov [#allocation9]  }
  0x16   :  { %128 = vmatpush.msra.mxu1 %v117_v6  ;;  %v197_v23 = vld [vmem:[%s374_s4] ss:$0 sm:$0xff]  ;;  %s176_s23 = sshll.u32 %s305_s2, 4  ;;  %s177_s23 = int_to_ptr.vmem [resolvable:$true] %s176_s23 }
  0x17   :  { %v146_v27 = vld [vmem:[%s375_s5] sm:$0x1] }
  0x18   :  { %129 = vmatpush.msra.mxu1 %v116_v7 }
  0x1a   :  { %130 = vmatpush.msra.mxu1 %v115_v8 }
  0x1c   :  { %131 = vmatpush.msra.mxu1 %v114_v9 }
  0x1e   :  { %132 = vmatpush.msra.mxu1 %v113_v10 }
  0x20   :  { %133 = vmatpush.msra.mxu1 %v112_v11 }
  0x22   :  { %134 = vmatpush.msra.mxu1 %v111_v12 }
  0x24   :  { %135 = vmatpush.msra.mxu1 %v110_v13 }
  0x26   :  { %136 = vmatpush.msra.mxu1 %v109_v14 }
  0x28   :  { %137 = vmatpush.msra.mxu1 %v108_v15 }
  0x2a   :  { %138 = vmatpush.msra.mxu1 %v107_v16 }
  0x2c   :  { %139 = vmatpush.msra.mxu1 %v106_v17 }
  0x2e   :  { %140 = vmatpush.msra.mxu1 %v105_v18 }
  0x8f   :  { %v101_v20 = vpop.f32.mrf.mxu0 }
  0x90   :  { %v102_v21 = vadd.f32 %v196_v19, %v101_v20 }
  0x92   :  { %v104_v22 = vmax.f32 %v102_v21, 0.0 }
  0x94   :  { %141 = vmatmul.f32.vlgmr.msra.gmra.mxu1 %v104_v22 }
 0x111   :  { %v142_v24 = vpop.f32.mrf.mxu1 }
 0x112   :  { %v143_v25 = vadd.f32 %v197_v23, %v142_v24 }
 0x114   :  { %v145_v26 = vmax.f32 %v143_v25, 0.0 }
 0x116   :  { %164 = vmatpush.xpose.msra.mxu2 %v145_v26 }
 0x119   :  { %165 = vmatmul.f32.vlgmr.msra.gmra.mxu2 %v146_v27 }
 0x19c   :  { %v166_v29 = vpop.f32.mrf.mxu2 }
 0x19d   :  { %v167_v30 = vadd.f32 %v166_v29, %v148_v28 }
 0x19f   :  { %170 = vst.msk [vmem:[#allocation9] sm:$0x1] %vm169_vm1, %v167_v30 }
 0x1a0   :  { %181 = dma.vmem_to_hbm [thread:$0]  %s177_s23, 16, %s179_s26, [#allocation5]  }
 0x1a1   :  { %298 = dma.done.wait [#allocation5], 16  }
 0x1a2   :  { %299 = vsyncadd [#allocation5], 4294967280 }
 0x1a3   :  { %186 = vsyncpa [#allocation4], 1 }
 0x1a4   :  { %187 = vsyncpa [#allocation7], 1 }
 0x1a5   :  { %188 = vsyncpa [#allocation5], 1 }

</bundles_post_ra>
